<compile_context>
chip_gen: v7x
topology: tpu7x:2x2x1
jax: 0.10.0
libtpu: 0.0.40
codegen_flags: <defaults>
</compile_context>

<pallas_src>
import jax
import jax.numpy as jnp
from jax.experimental import pallas as pl
from jax.experimental.pallas import tpu as pltpu


# ---------------------------------------------------------------------------
# Kernel
# ---------------------------------------------------------------------------
def lyrics_embedding_kernel(tok_ref, projb_ref, out_ref):
    # tok_ref   : (TB, S) int32   token ids                      (VMEM)
    # projb_ref : (1, V)  float32 folded table (emb @ fc_w + b)  (VMEM, lane-dense)
    # out_ref   : (TB, 1) float32 sigmoid output                 (VMEM)
    TB, S = tok_ref.shape
    V = projb_ref.shape[1]

    # Clamp like jnp.take; also guarantees sum(one-hot) == S for the bias fold.
    tok = jnp.clip(tok_ref[...], 0, V - 1)                          # (TB, S)

    # Hoisted once (JAX does not CSE broadcast_in_dim).
    iota_bv = jax.lax.broadcasted_iota(jnp.int32, (TB, V), 1)       # (TB, V)
    proj_bv = jnp.broadcast_to(projb_ref[...], (TB, V))             # (TB, V)

    # Directly accumulate the selected proj_b rows in f32: pure select/add
    # chain on the VPU, no int32 counts vreg and no separate multiply.
    # S is a static Python int -> fully unrolled.
    acc = jnp.zeros((TB, V), jnp.float32)
    for s in range(S):
        hit = tok[:, s:s + 1] == iota_bv                            # (TB, V) bool
        acc = acc + jnp.where(hit, proj_bv, 0.0)

    # logits = (counts · (proj + b)) / S  ==  mean_emb @ fc_w + fc_b
    logits = jnp.sum(acc, axis=-1, keepdims=True) * (1.0 / S)       # (TB, 1)
    out_ref[...] = jax.nn.sigmoid(logits)


# ---------------------------------------------------------------------------
# pallas_call wrapper (gridless for small B; batch-parallel grid for large B)
# ---------------------------------------------------------------------------
_GRID_MIN_BATCH = 64   # below this, grid-step overhead (~0.35 us/step) > work
_TB = 32               # batch tile (multiple of 8 sublanes)


def lyrics_embedding_forward(tokens, proj_b):
    """tokens: (B, S) int32; proj_b: (1, V) f32 (pre-folded emb@fc_w + fc_b)."""
    B, S = tokens.shape
    V = proj_b.shape[1]

    use_grid = (B >= _GRID_MIN_BATCH) and (B % _TB == 0)

    if not use_grid:
        # Gridless, fully VMEM-resident: everything fits in a handful of vregs.
        return pl.pallas_call(
            lyrics_embedding_kernel,
            out_shape=jax.ShapeDtypeStruct((B, 1), jnp.float32),
            in_specs=[
                pl.BlockSpec(memory_space=pltpu.MemorySpace.VMEM),   # tokens
                pl.BlockSpec(memory_space=pltpu.MemorySpace.VMEM),   # proj_b
            ],
            out_specs=pl.BlockSpec(memory_space=pltpu.MemorySpace.VMEM),
        )(tokens, proj_b)

    # Large batch: 1-D parallel grid over batch tiles; the (1, V) proj slab
    # stays VMEM-resident (constant index_map), tokens/outputs tile over batch.
    return pl.pallas_call(
        lyrics_embedding_kernel,
        out_shape=jax.ShapeDtypeStruct((B, 1), jnp.float32),
        grid_spec=pltpu.PrefetchScalarGridSpec(
            num_scalar_prefetch=0,
            grid=(B // _TB,),
            in_specs=[
                pl.BlockSpec((_TB, S), lambda i: (i, 0)),            # tokens
                pl.BlockSpec((1, V), lambda i: (0, 0)),              # proj_b
            ],
            out_specs=pl.BlockSpec((_TB, 1), lambda i: (i, 0)),
        ),
        compiler_params=pltpu.CompilerParams(
            dimension_semantics=("parallel",)),
    )(tokens, proj_b)


def make_lyrics_embedding_forward(emb_table, fc_w, fc_b):
    """Parameter-load-time transform.

    Folds the Linear layer (weight AND bias) into the embedding table exactly
    once, then returns a jitted forward over tokens only.  emb_table: (V, E),
    fc_w: (E, 1) (transpose of PyTorch nn.Linear.weight), fc_b: (1,) or (1, 1).
    """
    V, E = emb_table.shape
    # One-time fold; HIGHEST precision is fine here since it is off the
    # per-call path.
    proj = jnp.dot(emb_table.astype(jnp.float32), fc_w.astype(jnp.float32),
                   precision=jax.lax.Precision.HIGHEST)              # (V, 1)
    proj_b = (jnp.reshape(proj, (1, V))
              + jnp.reshape(fc_b, (1, 1)).astype(jnp.float32))       # (1, V)
    proj_b = jax.block_until_ready(proj_b)                           # materialize once

    @jax.jit
    def forward(tokens):
        return lyrics_embedding_forward(tokens, proj_b)

    return forward


# ---------------------------------------------------------------------------
# Plain-JAX reference matching the PyTorch forward
# ---------------------------------------------------------------------------
def reference_forward(tokens, emb_table, fc_w, fc_b):
    embedded = jnp.take(emb_table, tokens, axis=0)                   # (B, S, E)
    embedded_mean = jnp.mean(embedded, axis=1)                       # (B, E)
    logits = jnp.dot(embedded_mean, fc_w,
                     precision=jax.lax.Precision.HIGHEST) + jnp.reshape(fc_b, (1, 1))
    return jax.nn.sigmoid(logits)                                    # (B, 1)


if __name__ == "__main__":
    vocab_size = 128
    embedding_dim = 50
    seq = 8

    key = jax.random.PRNGKey(0)
    k_tok, k_emb, k_w, k_b, k_tok_big = jax.random.split(key, 5)

    # Deterministic synthetic parameters.
    emb_table = jax.random.normal(k_emb, (vocab_size, embedding_dim), dtype=jnp.float32)
    fc_w = jax.random.normal(k_w, (embedding_dim, 1), dtype=jnp.float32) * 0.1
    fc_b = jax.random.normal(k_b, (1, 1), dtype=jnp.float32) * 0.1

    # Parameter-load-time fold (amortized across forward calls).
    fwd = make_lyrics_embedding_forward(emb_table, fc_w, fc_b)

    # --- small batch (gridless path) ---
    batch = 8
    tokens = jax.random.randint(k_tok, (batch, seq), 0, vocab_size, dtype=jnp.int32)
    out = jax.block_until_ready(fwd(tokens))
    ref = reference_forward(tokens, emb_table, fc_w, fc_b)
    assert out.shape == (batch, 1), out.shape
    assert jnp.allclose(out, ref, atol=1e-5, rtol=1e-5), (out, ref)

    # --- large batch (parallel batch-grid path) ---
    batch_big = 128
    tokens_big = jax.random.randint(k_tok_big, (batch_big, seq), 0, vocab_size,
                                    dtype=jnp.int32)
    out_big = jax.block_until_ready(fwd(tokens_big))
    ref_big = reference_forward(tokens_big, emb_table, fc_w, fc_b)
    assert out_big.shape == (batch_big, 1), out_big.shape
    assert jnp.allclose(out_big, ref_big, atol=1e-5, rtol=1e-5), (out_big, ref_big)

    print("KERNEL_OK")
</pallas_src>

<mosaic_0001>
module attributes {stable_mosaic.version = 11 : i64} {
  func.func @lyrics_embedding_kernel(%arg0: memref<8x8xi32, #tpu.memory_space<vmem>>, %arg1: memref<1x128xf32, #tpu.memory_space<vmem>>, %arg2: memref<8x1xf32, #tpu.memory_space<vmem>>) attributes {dimension_semantics = [], scalar_prefetch = 0 : i64, scratch_operands = 0 : i64, tpu.core_type = #tpu.core_type<tc>} {
    %c0 = arith.constant 0 : index
    %c0_0 = arith.constant 0 : index
    %0 = vector.load %arg0[%c0, %c0_0] : memref<8x8xi32, #tpu.memory_space<vmem>>, vector<8x8xi32>
    %c0_i32 = arith.constant 0 : i32
    %c127_i32 = arith.constant 127 : i32
    %1 = vector.broadcast %c0_i32 : i32 to vector<8x8xi32>
    %2 = arith.maxsi %1, %0 : vector<8x8xi32>
    %3 = vector.broadcast %c127_i32 : i32 to vector<8x8xi32>
    %4 = arith.minsi %3, %2 : vector<8x8xi32>
    %5 = tpu.iota {dimensions = array<i32: 1>} : vector<8x128xi32>
    %c0_1 = arith.constant 0 : index
    %c0_2 = arith.constant 0 : index
    %6 = vector.load %arg1[%c0_1, %c0_2] : memref<1x128xf32, #tpu.memory_space<vmem>>, vector<1x128xf32>
    %7 = vector.shape_cast %6 : vector<1x128xf32> to vector<1x128xf32>
    %8 = vector.broadcast %7 : vector<1x128xf32> to vector<8x128xf32>
    %cst = arith.constant 0.000000e+00 : f32
    %9 = vector.broadcast %cst : f32 to vector<8x128xf32>
    %10 = vector.extract_strided_slice %4 {offsets = [0, 0], sizes = [8, 1], strides = [1, 1]} : vector<8x8xi32> to vector<8x1xi32>
    %11 = vector.broadcast %10 : vector<8x1xi32> to vector<8x128xi32>
    %12 = arith.cmpi eq, %11, %5 : vector<8x128xi32>
    %cst_3 = arith.constant 0.000000e+00 : f32
    %13 = vector.broadcast %cst_3 : f32 to vector<8x128xf32>
    %14 = arith.select %12, %8, %13 : vector<8x128xi1>, vector<8x128xf32>
    %15 = arith.addf %9, %14 : vector<8x128xf32>
    %16 = vector.extract_strided_slice %4 {offsets = [0, 1], sizes = [8, 1], strides = [1, 1]} : vector<8x8xi32> to vector<8x1xi32>
    %17 = vector.broadcast %16 : vector<8x1xi32> to vector<8x128xi32>
    %18 = arith.cmpi eq, %17, %5 : vector<8x128xi32>
    %cst_4 = arith.constant 0.000000e+00 : f32
    %19 = vector.broadcast %cst_4 : f32 to vector<8x128xf32>
    %20 = arith.select %18, %8, %19 : vector<8x128xi1>, vector<8x128xf32>
    %21 = arith.addf %15, %20 : vector<8x128xf32>
    %22 = vector.extract_strided_slice %4 {offsets = [0, 2], sizes = [8, 1], strides = [1, 1]} : vector<8x8xi32> to vector<8x1xi32>
    %23 = vector.broadcast %22 : vector<8x1xi32> to vector<8x128xi32>
    %24 = arith.cmpi eq, %23, %5 : vector<8x128xi32>
    %cst_5 = arith.constant 0.000000e+00 : f32
    %25 = vector.broadcast %cst_5 : f32 to vector<8x128xf32>
    %26 = arith.select %24, %8, %25 : vector<8x128xi1>, vector<8x128xf32>
    %27 = arith.addf %21, %26 : vector<8x128xf32>
    %28 = vector.extract_strided_slice %4 {offsets = [0, 3], sizes = [8, 1], strides = [1, 1]} : vector<8x8xi32> to vector<8x1xi32>
    %29 = vector.broadcast %28 : vector<8x1xi32> to vector<8x128xi32>
    %30 = arith.cmpi eq, %29, %5 : vector<8x128xi32>
    %cst_6 = arith.constant 0.000000e+00 : f32
    %31 = vector.broadcast %cst_6 : f32 to vector<8x128xf32>
    %32 = arith.select %30, %8, %31 : vector<8x128xi1>, vector<8x128xf32>
    %33 = arith.addf %27, %32 : vector<8x128xf32>
    %34 = vector.extract_strided_slice %4 {offsets = [0, 4], sizes = [8, 1], strides = [1, 1]} : vector<8x8xi32> to vector<8x1xi32>
    %35 = vector.broadcast %34 : vector<8x1xi32> to vector<8x128xi32>
    %36 = arith.cmpi eq, %35, %5 : vector<8x128xi32>
    %cst_7 = arith.constant 0.000000e+00 : f32
    %37 = vector.broadcast %cst_7 : f32 to vector<8x128xf32>
    %38 = arith.select %36, %8, %37 : vector<8x128xi1>, vector<8x128xf32>
    %39 = arith.addf %33, %38 : vector<8x128xf32>
    %40 = vector.extract_strided_slice %4 {offsets = [0, 5], sizes = [8, 1], strides = [1, 1]} : vector<8x8xi32> to vector<8x1xi32>
    %41 = vector.broadcast %40 : vector<8x1xi32> to vector<8x128xi32>
    %42 = arith.cmpi eq, %41, %5 : vector<8x128xi32>
    %cst_8 = arith.constant 0.000000e+00 : f32
    %43 = vector.broadcast %cst_8 : f32 to vector<8x128xf32>
    %44 = arith.select %42, %8, %43 : vector<8x128xi1>, vector<8x128xf32>
    %45 = arith.addf %39, %44 : vector<8x128xf32>
    %46 = vector.extract_strided_slice %4 {offsets = [0, 6], sizes = [8, 1], strides = [1, 1]} : vector<8x8xi32> to vector<8x1xi32>
    %47 = vector.broadcast %46 : vector<8x1xi32> to vector<8x128xi32>
    %48 = arith.cmpi eq, %47, %5 : vector<8x128xi32>
    %cst_9 = arith.constant 0.000000e+00 : f32
    %49 = vector.broadcast %cst_9 : f32 to vector<8x128xf32>
    %50 = arith.select %48, %8, %49 : vector<8x128xi1>, vector<8x128xf32>
    %51 = arith.addf %45, %50 : vector<8x128xf32>
    %52 = vector.extract_strided_slice %4 {offsets = [0, 7], sizes = [8, 1], strides = [1, 1]} : vector<8x8xi32> to vector<8x1xi32>
    %53 = vector.broadcast %52 : vector<8x1xi32> to vector<8x128xi32>
    %54 = arith.cmpi eq, %53, %5 : vector<8x128xi32>
    %cst_10 = arith.constant 0.000000e+00 : f32
    %55 = vector.broadcast %cst_10 : f32 to vector<8x128xf32>
    %56 = arith.select %54, %8, %55 : vector<8x128xi1>, vector<8x128xf32>
    %57 = arith.addf %51, %56 : vector<8x128xf32>
    %cst_11 = arith.constant dense<0.000000e+00> : vector<8xf32>
    %58 = vector.multi_reduction <add>, %57, %cst_11 [1] : vector<8x128xf32> to vector<8xf32>
    %59 = vector.shape_cast %58 : vector<8xf32> to vector<8x1xf32>
    %cst_12 = arith.constant 1.250000e-01 : f32
    %60 = vector.broadcast %cst_12 : f32 to vector<8x1xf32>
    %61 = arith.mulf %59, %60 : vector<8x1xf32>
    %62 = arith.negf %61 : vector<8x1xf32>
    %63 = math.exp %62 : vector<8x1xf32>
    %cst_13 = arith.constant 1.000000e+00 : f32
    %64 = vector.broadcast %cst_13 : f32 to vector<8x1xf32>
    %65 = arith.addf %64, %63 : vector<8x1xf32>
    %66 = arith.divf %64, %65 : vector<8x1xf32>
    %c0_14 = arith.constant 0 : index
    %c0_15 = arith.constant 0 : index
    %67 = vector.load %arg2[%c0_14, %c0_15] : memref<8x1xf32, #tpu.memory_space<vmem>>, vector<8x1xf32>
    tpu.vector_store %arg2[%c0_14, %c0_15], %66 {strides = array<i32>} : memref<8x1xf32, #tpu.memory_space<vmem>>, vector<8x1xf32>,
    return
  }
}

</mosaic_0001>

<bundles_post_ra>
// kernel: forward.1
= control target key start
LH: loop header
LB: loop body
LE: loop exit
PB: predicated region body
PF: predicated region fallthrough
CT: control target
= control target key end

     0   :  { %7 = vsyncpa [#allocation3], 0  ;;  %s149_s9 = smov [#allocation2]   ;;  %s191_s0 = inlined_call_operand.hbm [shape: s32[8,8], index: 0, kind: input, shape index: {}]   ;;  %s192_s1 = inlined_call_operand.vmem [shape: f32[1,128], index: 1, kind: input, shape index: {}]   ;;  %s193_s2 = inlined_call_operand.vmem [shape: f32[8,1], index: 2, kind: output, shape index: {}]  }
   0x1   :  { %s14_s10 = sshll.u32 %s149_s9, 4  ;;  %s125_s13 = scalar_lea.hbm %s191_s0, 128  ;;  %s15_s10 = int_to_ptr.vmem [resolvable:$true] %s14_s10 }
   0x2   :  { %p126_p0 = scmp.ne.s32.totalorder %s191_s0, %s125_s13  ;;  %p129_p1 = scmp.lt.u32.totalorder %s125_s13, %s191_s0 }
   0x4   :  { %p131_p2 = pnand %p129_p1, %p126_p0 }
   0x6   :  { %134 = shalt.err (!%p131_p2)
}
   0x7   :  { %s135_s18 = scalar_lea.vmem %s15_s10, 128  ;;  %p140_p4 = scmp.lt.s32.totalorder %s15_s10, %s15_s10 }
   0x8   :  { %p136_p3 = scmp.ne.s32.totalorder %s15_s10, %s135_s18  ;;  %p141_p5 = scmp.lt.s32.totalorder %s135_s18, %s135_s18 }
   0xa   :  { %p142_p6 = por %p141_p5, %p140_p4 }
   0xc   :  { %p143_p7 = pnand %p142_p6, %p136_p3 }
   0xe   :  { %146 = shalt.err (!%p143_p7)
}
   0xf   :  { %17 = dma.hbm_to_vmem [thread:$0]  %s191_s0, 128, %s15_s10, [#allocation3]  }
  0x10   :  { %147 = dma.done.wait [#allocation3], 128  }
  0x11   :  { %148 = vsyncadd [#allocation3], 4294967168  ;;  %v150_v0 = vmov 2   ;;  %v151_v1 = vmov 0   ;;  %v23_v2 = vld [vmem:[#allocation2] sm:$0xff]  ;;  %v152_v5 = vmov 3   ;;  %v28_v11 = vlaneseq }
  0x12   :  { %114 = vset.pattern.permute.xlu1 %v150_v0  ;;  %112 = vset.pattern.permute.xlu0 %v151_v1  ;;  %vm24_vm0 = vcmp.gt.s32.totalorder %v23_v2, 0  ;;  %v153_v6 = vmov 1   ;;  %v154_v7 = vmov 4   ;;  %v155_v8 = vmov 5   ;;  %v101_v17 = vld [vmem:[%s192_s1] ss:$0 sm:$0xff] }
  0x13   :  { %v25_v3 = vsel %vm24_vm0, %v23_v2, 0  ;;  %v156_v9 = vmov 6   ;;  %v157_v10 = vmov 7   ;;  %v29_v14 = vand.u32 127, %v28_v11 }
  0x14   :  { %vm26_vm1 = vcmp.lt.s32.totalorder %v25_v3, 127  ;;  %vm94_vm10 = vcmask 7168  }
  0x15   :  { %v27_v4 = vsel %vm26_vm1, %v25_v3, 127 }
  0x16   :  { %50 = vperm.xlu1 %114, %v27_v4   ;;  %38 = vperm.xlu0 %112, %v27_v4  }
  0x1a   :  { %115 = vset.pattern.permute.xlu1 %v152_v5  ;;  %113 = vset.pattern.permute.xlu0 %v153_v6 }
  0x1b   :  { %56 = vperm.xlu1 %115, %v27_v4   ;;  %44 = vperm.xlu0 %113, %v27_v4  }
  0x1f   :  { %116 = vset.pattern.permute.xlu1 %v154_v7  ;;  %117 = vset.pattern.permute.xlu0 %v155_v8 }
  0x20   :  { %62 = vperm.xlu1 %116, %v27_v4   ;;  %68 = vperm.xlu0 %117, %v27_v4  }
  0x24   :  { %118 = vset.pattern.permute.xlu1 %v156_v9  ;;  %120 = vset.pattern.permute.xlu0 %v157_v10 }
  0x25   :  { %74 = vperm.xlu1 %118, %v27_v4  }
  0x29   :  { %119 = vset.pattern.permute.xlu1 %v157_v10 }
  0x2a   :  { %80 = vperm.xlu1 %119, %v27_v4  }
  0x95   :  { %v51_v12 = vpop.permute.xlu1 %50  ;;  %v39_v13 = vpop.permute.xlu0 %38 }
  0x96   :  { %vm40_vm2 = vcmp.eq.s32.totalorder %v39_v13, %v29_v14  ;;  %vm52_vm3 = vcmp.eq.s32.totalorder %v51_v12, %v29_v14 }
  0x97   :  { %v41_v18 = vsel %vm40_vm2, %v101_v17, 0.0  ;;  %v53_v21 = vsel %vm52_vm3, %v101_v17, 0.0 }
  0x9a   :  { %v57_v15 = vpop.permute.xlu1 %56  ;;  %v45_v16 = vpop.permute.xlu0 %44 }
  0x9b   :  { %vm46_vm4 = vcmp.eq.s32.totalorder %v45_v16, %v29_v14  ;;  %vm58_vm5 = vcmp.eq.s32.totalorder %v57_v15, %v29_v14 }
  0x9c   :  { %v47_v19 = vsel %vm46_vm4, %v101_v17, 0.0  ;;  %v59_v25 = vsel %vm58_vm5, %v101_v17, 0.0 }
  0x9d   :  { %v48_v20 = vadd.f32 %v47_v19, %v41_v18 }
  0x9f   :  { %v54_v22 = vadd.f32 %v53_v21, %v48_v20  ;;  %v63_v23 = vpop.permute.xlu1 %62  ;;  %v69_v24 = vpop.permute.xlu0 %68 }
  0xa0   :  { %vm64_vm6 = vcmp.eq.s32.totalorder %v63_v23, %v29_v14  ;;  %vm70_vm7 = vcmp.eq.s32.totalorder %v69_v24, %v29_v14 }
  0xa1   :  { %v60_v26 = vadd.f32 %v59_v25, %v54_v22  ;;  %v65_v27 = vsel %vm64_vm6, %v101_v17, 0.0  ;;  %v71_v29 = vsel %vm70_vm7, %v101_v17, 0.0 }
  0xa3   :  { %v66_v28 = vadd.f32 %v65_v27, %v60_v26 }
  0xa4   :  { %v75_v30 = vpop.permute.xlu1 %74 }
  0xa5   :  { %vm76_vm8 = vcmp.eq.s32.totalorder %v75_v30, %v29_v14  ;;  %v72_v31 = vadd.f32 %v71_v29, %v66_v28 }
  0xa6   :  { %v77_v32 = vsel %vm76_vm8, %v101_v17, 0.0 }
  0xa7   :  { %v78_v34 = vadd.f32 %v77_v32, %v72_v31 }
  0xa9   :  { %v81_v33 = vpop.permute.xlu1 %80 }
  0xaa   :  { %vm82_vm9 = vcmp.eq.s32.totalorder %v81_v33, %v29_v14 }
  0xab   :  { %v83_v35 = vsel %vm82_vm9, %v101_v17, 0.0 }
  0xac   :  { %v84_v36 = vadd.f32 %v83_v35, %v78_v34 }
  0xae   :  { %85 = vadd.xlane.f32.xlu0 %v84_v36 }
 0x13b   :  { %v86_v37 = vpop.xlane.xlu0 %85 }
 0x13c   :  { %v102_v38 = vmul.f32 -0.125, %v86_v37 }
 0x13e   :  { %v89_v39 = vmul.f32 1.442695, %v102_v38 }
 0x140   :  { %121 = vpow2.f32 %v89_v39 }
 0x14a   :  { %v122_v40 = vpop.eup %121 }
 0x14b   :  { %v91_v41 = vadd.f32 1.0, %v122_v40 }
 0x14d   :  { %123 = vrcp.f32 %v91_v41 }
 0x157   :  { %v124_v42 = vpop.eup %123 }
 0x158   :  { %95 = vst.msk [vmem:[%s193_s2] sm:$0xff] %vm94_vm10, %v124_v42 }
 0x159   :  { %100 = vsyncpa [#allocation3], 1 }

</bundles_post_ra>
